<compile_context>
chip_gen: v6e
topology: v6e:2x2x1
jax: 0.10.0
libtpu: 0.0.40
codegen_flags: <defaults>
</compile_context>

<pallas_src>
import functools

import jax
import jax.numpy as jnp
from jax.experimental import pallas as pl
from jax.experimental.pallas import tpu as pltpu

BN_EPS = 1e-5


# --------------------------------------------------------------------------- #
# Hardware-aware planning
# --------------------------------------------------------------------------- #
def _tpu_defaults():
    """Return (vmem_capacity_bytes, has_two_tensorcores_per_chip), with safe fallbacks."""
    vmem_cap = 64 << 20                       # conservative default (v7x per-core VMEM)
    try:
        info = pltpu.get_tpu_info()
        vmem_cap = int(getattr(info, "vmem_capacity_bytes", vmem_cap))
    except Exception:
        pass
    vmem_cap = min(max(vmem_cap, 32 << 20), 128 << 20)
    multi_tc = False
    try:
        kind = jax.devices()[0].device_kind.lower()
        multi_tc = ("v7" in kind) or ("7x" in kind)   # v7x: 2 TensorCores per chip
    except Exception:
        multi_tc = False
    return vmem_cap, multi_tc


def _vmem_limit(need_bytes, vmem_cap):
    # ~48 MiB ceiling on v7x (64 MiB physical, leave Mosaic scratch headroom),
    # ~100 MiB on v5e/v6e (128 MiB physical).
    cap = min(vmem_cap - (16 << 20), 100 << 20)
    return int(min(max(need_bytes + (8 << 20), 24 << 20), cap))


def _plan_single_pass(bc, hw, itemsize, vmem_cap, multi_tc):
    """Lane tile for the fused one-pass kernel; None if BC is too large to keep
    the full B*C extent resident in a single block."""
    hw128 = -(-hw // 128) * 128
    budget = (vmem_cap * 5) // 16             # ~20 MiB on v7x, ~40 MiB on v5e/v6e
    hard = min(vmem_cap - (16 << 20), 100 << 20) - (8 << 20)
    # bytes per lane: x-in + out (double-buffered) + ~3 f32 block-sized temporaries.
    per_lane = 2 * 2 * bc * itemsize + 3 * bc * 4
    if 128 * per_lane > hard:
        return None
    max_tile = max(128, (budget // per_lane) // 128 * 128)
    tile = min(hw128, max_tile, 1024)
    # Only split a single full-width block on a 2-TensorCore part (v7x); on the
    # single-TC v5e/v6e the largest tile is strictly better.
    if multi_tc and pl.cdiv(hw, tile) < 2 and hw >= 256:
        tile = max(128, pl.cdiv(pl.cdiv(hw, 2), 128) * 128)
    # If the tile exceeds HW, use the full lane extent (allowed: equals array dim).
    return min(tile, hw)


def _plan_two_pass(bc, hw, itemsize, vmem_cap):
    budget = (vmem_cap * 5) // 16
    tile = min(512, -(-hw // 128) * 128)
    if tile > hw:
        tile = hw
    per_row = tile * (2 * 2 * itemsize + 3 * 4)
    if bc >= 8:
        bc_tile = min((bc // 8) * 8, max(8, (budget // per_row) // 8 * 8))
    else:
        bc_tile = bc
    return bc_tile, tile


# --------------------------------------------------------------------------- #
# Single-pass kernel (full BC resident, grid over lane tiles)
# --------------------------------------------------------------------------- #
def _single_pass_kernel(x_ref, ab_ref, o_ref):
    # x_ref: (BC, T) block; ab_ref: resident (2, hw_ab) params
    # (row 0 = wbn*gamma, row 1 = wbn*beta); o_ref: (BC, T).
    bc, tile = x_ref.shape
    off = pl.multiple_of(pl.program_id(0) * tile, 128)
    ab = ab_ref[:, pl.ds(off, tile)]                  # sliced from the resident slab
    a = ab[0:1, :]
    bb = ab[1:2, :]

    x = x_ref[...].astype(jnp.float32)
    inv_n = 1.0 / bc
    # Fused statistics: one traversal yields both moments.
    s1 = jnp.sum(x, axis=0, keepdims=True)            # (1, T)
    s2 = jnp.sum(x * x, axis=0, keepdims=True)        # (1, T)
    mu = s1 * inv_n
    var = jnp.maximum(s2 * inv_n - mu * mu, 0.0)       # biased var (training BN)
    xhat = (x - mu) * jax.lax.rsqrt(var + BN_EPS)
    z = a * xhat + bb                                  # == wbn * (gamma*xhat + beta)
    o_ref[...] = (jax.nn.sigmoid(z) * x).astype(o_ref.dtype)   # * residual


def _single_pass(x2, ab_pad, tile, vmem_cap):
    bc, hw = x2.shape
    itemsize = x2.dtype.itemsize
    steps = pl.cdiv(hw, tile)
    need = (2 * 2 * tile * bc * itemsize          # x in + out, double-buffered
            + 3 * tile * bc * 4                   # f32 working set inside the kernel
            + 2 * ab_pad.size * 4)                # resident params
    return pl.pallas_call(
        _single_pass_kernel,
        out_shape=jax.ShapeDtypeStruct((bc, hw), x2.dtype),
        grid_spec=pltpu.PrefetchScalarGridSpec(
            num_scalar_prefetch=0,
            grid=(steps,),
            in_specs=[
                pl.BlockSpec((bc, tile), lambda j: (0, j)),       # x slab
                pl.BlockSpec(ab_pad.shape, lambda j: (0, 0)),     # params: fetched once
            ],
            out_specs=pl.BlockSpec((bc, tile), lambda j: (0, j)),
        ),
        compiler_params=pltpu.CompilerParams(
            dimension_semantics=("parallel",),
            vmem_limit_bytes=_vmem_limit(need, vmem_cap),
        ),
    )(x2, ab_pad)


# --------------------------------------------------------------------------- #
# Two-pass fallback for very large BC (stats pass + apply pass)
# --------------------------------------------------------------------------- #
def _stats_kernel(bc_total, x_ref, s_ref, acc_ref):
    k = pl.program_id(1)

    @pl.when(k == 0)
    def _():
        acc_ref[...] = jnp.zeros_like(acc_ref)

    x = x_ref[...].astype(jnp.float32)
    # Mask out-of-bounds sublanes of the (possibly partial) last BC block so
    # garbage rows never enter the per-lane sums.
    row = jax.lax.broadcasted_iota(jnp.int32, x.shape, 0)
    valid = row < (bc_total - k * x.shape[0])
    xm = jnp.where(valid, x, 0.0)
    acc_ref[0:1, :] += jnp.sum(xm, axis=0, keepdims=True)
    acc_ref[1:2, :] += jnp.sum(xm * xm, axis=0, keepdims=True)

    @pl.when(k == pl.num_programs(1) - 1)
    def _():
        s_ref[...] = acc_ref[...]


def _apply_kernel(bc_total, x_ref, s_ref, ab_ref, o_ref):
    x = x_ref[...].astype(jnp.float32)
    inv_n = 1.0 / bc_total
    mu = s_ref[0:1, :] * inv_n
    var = jnp.maximum(s_ref[1:2, :] * inv_n - mu * mu, 0.0)
    xhat = (x - mu) * jax.lax.rsqrt(var + BN_EPS)
    z = ab_ref[0:1, :] * xhat + ab_ref[1:2, :]
    o_ref[...] = (jax.nn.sigmoid(z) * x).astype(o_ref.dtype)


def _two_pass(x2, ab, bc_tile, tile, vmem_cap):
    bc, hw = x2.shape
    itemsize = x2.dtype.itemsize
    n_hw = pl.cdiv(hw, tile)
    n_bc = pl.cdiv(bc, bc_tile)
    need = bc_tile * tile * (2 * 2 * itemsize + 3 * 4) + 4 * 2 * tile * 4

    stats = pl.pallas_call(
        functools.partial(_stats_kernel, bc),
        out_shape=jax.ShapeDtypeStruct((2, hw), jnp.float32),
        grid_spec=pltpu.PrefetchScalarGridSpec(
            num_scalar_prefetch=0,
            grid=(n_hw, n_bc),
            in_specs=[pl.BlockSpec((bc_tile, tile), lambda i, k: (k, i))],
            out_specs=pl.BlockSpec((2, tile), lambda i, k: (0, i)),
            scratch_shapes=[pltpu.VMEM((2, tile), jnp.float32)],
        ),
        compiler_params=pltpu.CompilerParams(
            dimension_semantics=("parallel", "arbitrary"),
            vmem_limit_bytes=_vmem_limit(need, vmem_cap),
        ),
    )(x2)

    out = pl.pallas_call(
        functools.partial(_apply_kernel, bc),
        out_shape=jax.ShapeDtypeStruct((bc, hw), x2.dtype),
        grid_spec=pltpu.PrefetchScalarGridSpec(
            num_scalar_prefetch=0,
            grid=(n_hw, n_bc),
            in_specs=[
                pl.BlockSpec((bc_tile, tile), lambda i, k: (k, i)),
                pl.BlockSpec((2, tile), lambda i, k: (0, i)),
                pl.BlockSpec((2, tile), lambda i, k: (0, i)),
            ],
            out_specs=pl.BlockSpec((bc_tile, tile), lambda i, k: (k, i)),
        ),
        compiler_params=pltpu.CompilerParams(
            dimension_semantics=("parallel", "parallel"),
            vmem_limit_bytes=_vmem_limit(need, vmem_cap),
        ),
    )(x2, stats, ab)
    return out


# --------------------------------------------------------------------------- #
# Public wrapper
# --------------------------------------------------------------------------- #
def spatial_att(x, gamma, beta, *, _force_two_pass_tiles=None):
    """x: (B, C, H, W); gamma/beta: (H*W,) BatchNorm2d affine params (feat_dim == H*W)."""
    b, c, h, w = x.shape
    hw = h * w
    bc = b * c
    assert gamma.shape == (hw,) and beta.shape == (hw,), "feat_dim must equal H*W"

    vmem_cap, multi_tc = _tpu_defaults()
    itemsize = x.dtype.itemsize

    # Fold |gamma|/sum|gamma| into the affine params (tiny one-time work) and pack
    # into a single (2, HW) slab -> one small resident param buffer.
    wbn = jnp.abs(gamma) / jnp.sum(jnp.abs(gamma))
    a = (wbn * gamma).astype(jnp.float32)
    bb = (wbn * beta).astype(jnp.float32)
    ab = jnp.stack([a, bb], axis=0)                    # (2, hw)

    x2 = x.reshape(bc, hw)                             # free reinterpretation

    if _force_two_pass_tiles is not None:              # test hook for the fallback path
        bc_tile, tile = _force_two_pass_tiles
        return _two_pass(x2, ab, bc_tile, tile, vmem_cap).reshape(b, c, h, w)

    tile = _plan_single_pass(bc, hw, itemsize, vmem_cap, multi_tc)
    if tile is None:
        # BC too large to keep the whole B*C extent in one block: two-pass scheme.
        bc_tile, ltile = _plan_two_pass(bc, hw, itemsize, vmem_cap)
        return _two_pass(x2, ab, bc_tile, ltile, vmem_cap).reshape(b, c, h, w)

    # Pad only the tiny param slab to a tile multiple so the in-kernel dynamic slice
    # stays in-bounds; x itself is NOT padded (partial lane blocks are masked).
    hw_ab = pl.cdiv(hw, tile) * tile
    if hw_ab != hw:
        ab = jnp.pad(ab, ((0, 0), (0, hw_ab - hw)))
    return _single_pass(x2, ab, tile, vmem_cap).reshape(b, c, h, w)


# --------------------------------------------------------------------------- #
# Pure-JAX reference of the exact PyTorch forward (training-mode BN)
# --------------------------------------------------------------------------- #
def _reference(x, gamma, beta):
    b, c, h, w = x.shape
    hw = h * w
    x2 = x.reshape(b * c, hw).astype(jnp.float32)
    mu = jnp.mean(x2, axis=0, keepdims=True)
    var = jnp.mean((x2 - mu) ** 2, axis=0, keepdims=True)
    y = gamma * (x2 - mu) / jnp.sqrt(var + BN_EPS) + beta
    wbn = jnp.abs(gamma) / jnp.sum(jnp.abs(gamma))
    return (jax.nn.sigmoid(wbn * y) * x2).astype(x.dtype).reshape(b, c, h, w)


if __name__ == "__main__":
    key = jax.random.PRNGKey(0)
    keys = jax.random.split(key, 9)

    def _case(kx, kg, kb, b, c, h, w, **kw):
        feat = h * w
        x = jax.random.normal(kx, (b, c, h, w), dtype=jnp.float32)
        gamma = 1.0 + 0.1 * jax.random.normal(kg, (feat,), dtype=jnp.float32)
        beta = 0.1 * jax.random.normal(kb, (feat,), dtype=jnp.float32)
        out = spatial_att(x, gamma, beta, **kw)
        jax.block_until_ready(out)
        ref = _reference(x, gamma, beta)
        assert out.shape == x.shape
        assert jnp.allclose(out, ref, atol=2e-5, rtol=2e-5), \
            f"mismatch vs reference for shape {(b, c, h, w)} {kw}"

    # 1) Aligned case: H*W is a multiple of 128.
    _case(keys[0], keys[1], keys[2], 2, 4, 16, 16)
    # 2) Ragged case: H*W % 128 != 0 — no padding of x, masked partial lane block.
    _case(keys[3], keys[4], keys[5], 2, 4, 10, 10)
    # 3) Large-BC fallback path (two-pass stats + apply), forced at a small shape
    #    so both the BC-block masking and the lane masking are exercised.
    _case(keys[6], keys[7], keys[8], 2, 5, 12, 12, _force_two_pass_tiles=(8, 128))

    print("KERNEL_OK")
</pallas_src>

<mosaic_0001>
module attributes {stable_mosaic.version = 11 : i64} {
  func.func @_single_pass_kernel(%arg0: i32, %arg1: memref<8x256xf32, #tpu.memory_space<vmem>>, %arg2: memref<2x256xf32, #tpu.memory_space<vmem>>, %arg3: memref<8x256xf32, #tpu.memory_space<vmem>>) attributes {dimension_semantics = [#tpu.dimension_semantics<parallel>], iteration_bounds = array<i64: 1>, scalar_prefetch = 0 : i64, scratch_operands = 0 : i64, tpu.core_type = #tpu.core_type<tc>, window_params = [{transform_indices = @transform_0, window_bounds = array<i64: 8, 256>}, {pipeline_mode = #tpu.pipeline_mode<synchronous>, transform_indices = @transform_1, window_bounds = array<i64: 2, 256>}, {transform_indices = @transform_2, window_bounds = array<i64: 8, 256>}]} {
    %c256_i32 = arith.constant 256 : i32
    %0 = arith.muli %arg0, %c256_i32 : i32
    %1 = tpu.assume_multiple %0, 128 : i32
    %c0 = arith.constant 0 : index
    %2 = arith.index_cast %1 : i32 to index
    %3 = vector.load %arg2[%c0, %2] : memref<2x256xf32, #tpu.memory_space<vmem>>, vector<2x256xf32>
    %4 = vector.extract_strided_slice %3 {offsets = [0, 0], sizes = [1, 256], strides = [1, 1]} : vector<2x256xf32> to vector<1x256xf32>
    %5 = vector.extract_strided_slice %3 {offsets = [1, 0], sizes = [1, 256], strides = [1, 1]} : vector<2x256xf32> to vector<1x256xf32>
    %c0_0 = arith.constant 0 : index
    %c0_1 = arith.constant 0 : index
    %6 = vector.load %arg1[%c0_0, %c0_1] : memref<8x256xf32, #tpu.memory_space<vmem>>, vector<8x256xf32>
    %cst = arith.constant dense<0.000000e+00> : vector<256xf32>
    %7 = vector.multi_reduction <add>, %6, %cst [0] : vector<8x256xf32> to vector<256xf32>
    %8 = vector.shape_cast %7 : vector<256xf32> to vector<1x256xf32>
    %9 = arith.mulf %6, %6 : vector<8x256xf32>
    %cst_2 = arith.constant dense<0.000000e+00> : vector<256xf32>
    %10 = vector.multi_reduction <add>, %9, %cst_2 [0] : vector<8x256xf32> to vector<256xf32>
    %11 = vector.shape_cast %10 : vector<256xf32> to vector<1x256xf32>
    %cst_3 = arith.constant 1.250000e-01 : f32
    %12 = vector.broadcast %cst_3 : f32 to vector<1x256xf32>
    %13 = arith.mulf %8, %12 : vector<1x256xf32>
    %cst_4 = arith.constant 1.250000e-01 : f32
    %14 = vector.broadcast %cst_4 : f32 to vector<1x256xf32>
    %15 = arith.mulf %11, %14 : vector<1x256xf32>
    %16 = arith.mulf %13, %13 : vector<1x256xf32>
    %17 = arith.subf %15, %16 : vector<1x256xf32>
    %cst_5 = arith.constant 0.000000e+00 : f32
    %18 = vector.broadcast %cst_5 : f32 to vector<1x256xf32>
    %19 = arith.maximumf %17, %18 : vector<1x256xf32>
    %20 = vector.broadcast %13 : vector<1x256xf32> to vector<8x256xf32>
    %21 = arith.subf %6, %20 : vector<8x256xf32>
    %cst_6 = arith.constant 9.99999974E-6 : f32
    %22 = vector.broadcast %cst_6 : f32 to vector<1x256xf32>
    %23 = arith.addf %19, %22 : vector<1x256xf32>
    %24 = math.rsqrt %23 : vector<1x256xf32>
    %25 = vector.broadcast %24 : vector<1x256xf32> to vector<8x256xf32>
    %26 = arith.mulf %21, %25 : vector<8x256xf32>
    %27 = vector.broadcast %4 : vector<1x256xf32> to vector<8x256xf32>
    %28 = arith.mulf %27, %26 : vector<8x256xf32>
    %29 = vector.broadcast %5 : vector<1x256xf32> to vector<8x256xf32>
    %30 = arith.addf %28, %29 : vector<8x256xf32>
    %31 = arith.negf %30 : vector<8x256xf32>
    %32 = math.exp %31 : vector<8x256xf32>
    %cst_7 = arith.constant 1.000000e+00 : f32
    %33 = vector.broadcast %cst_7 : f32 to vector<8x256xf32>
    %34 = arith.addf %33, %32 : vector<8x256xf32>
    %35 = arith.divf %33, %34 : vector<8x256xf32>
    %36 = arith.mulf %35, %6 : vector<8x256xf32>
    %c0_8 = arith.constant 0 : index
    %c0_9 = arith.constant 0 : index
    %37 = vector.load %arg3[%c0_8, %c0_9] : memref<8x256xf32, #tpu.memory_space<vmem>>, vector<8x256xf32>
    tpu.vector_store %arg3[%c0_8, %c0_9], %36 {strides = array<i32>} : memref<8x256xf32, #tpu.memory_space<vmem>>, vector<8x256xf32>,
    return
  }
  func.func @transform_0(%arg0: i32) -> (i32, i32) {
    %c0_i32 = arith.constant 0 : i32
    %c0_i32_0 = arith.constant 0 : i32
    return %c0_i32, %arg0 : i32, i32
  }
  func.func @transform_1(%arg0: i32) -> (i32, i32) {
    %c0_i32 = arith.constant 0 : i32
    %c0_i32_0 = arith.constant 0 : i32
    %c0_i32_1 = arith.constant 0 : i32
    return %c0_i32, %c0_i32_0 : i32, i32
  }
  func.func @transform_2(%arg0: i32) -> (i32, i32) {
    %c0_i32 = arith.constant 0 : i32
    %c0_i32_0 = arith.constant 0 : i32
    return %c0_i32, %arg0 : i32, i32
  }
}

</mosaic_0001>

<bundles_post_ra>
// kernel: tpu_custom_call.1
= control target key start
LH: loop header
LB: loop body
LE: loop exit
PB: predicated region body
PF: predicated region fallthrough
CT: control target
= control target key end

     0   :  { %7 = vsyncpa [#allocation3], 0  ;;  %s289_s0 = inlined_call_operand.hbm [shape: f32[8,256], index: 0, kind: input, shape index: {}]   ;;  %s290_s1 = inlined_call_operand.hbm [shape: f32[2,256], index: 1, kind: input, shape index: {}]   ;;  %s291_s2 = inlined_call_operand.hbm [shape: f32[8,256], index: 2, kind: output, shape index: {}]  }
   0x1   :  { %8 = vsyncpa [#allocation6], 0 }
   0x2   :  { %9 = vsyncpa [#allocation4], 0  ;;  %s246_s9 = smov [#allocation2]   ;;  %s247_s11 = smov [#allocation5]  }
   0x3   :  { %s16_s10 = sshll.u32 %s246_s9, 4  ;;  %s26_s12 = sshll.u32 %s247_s11, 4  ;;  %s17_s10 = int_to_ptr.vmem [resolvable:$true] %s16_s10  ;;  %s27_s12 = int_to_ptr.vmem [resolvable:$true] %s26_s12 }
   0x4   :  { %s188_s13 = scalar_lea.vmem %s17_s10, 256  ;;  %p193_p1 = scmp.lt.s32.totalorder %s17_s10, %s17_s10 }
   0x5   :  { %p189_p0 = scmp.ne.s32.totalorder %s17_s10, %s188_s13  ;;  %p194_p2 = scmp.lt.s32.totalorder %s188_s13, %s188_s13 }
   0x7   :  { %p195_p3 = por %p194_p2, %p193_p1 }
   0x9   :  { %p196_p4 = pnand %p195_p3, %p189_p0 }
   0xb   :  { %199 = shalt.err (!%p196_p4)
}
   0xc   :  { %19 = dma.hbm_to_vmem [thread:$0]  %s289_s0, 256, %s17_s10, [#allocation3]  }
   0xd   :  { %s208_s16 = scalar_lea.vmem %s27_s12, 64  ;;  %p213_p6 = scmp.lt.s32.totalorder %s27_s12, %s27_s12 }
   0xe   :  { %p209_p5 = scmp.ne.s32.totalorder %s27_s12, %s208_s16  ;;  %p214_p7 = scmp.lt.s32.totalorder %s208_s16, %s208_s16 }
  0x10   :  { %p215_p8 = por %p214_p7, %p213_p6 }
  0x12   :  { %p216_p9 = pnand %p215_p8, %p209_p5 }
  0x14   :  { %219 = shalt.err (!%p216_p9)
}
  0x15   :  { %29 = dma.hbm_to_vmem [thread:$0]  %s290_s1, 64, %s27_s12, [#allocation6]  }
  0x16   :  { %240 = dma.done.wait [#allocation3], 256  }
  0x17   :  { %241 = vsyncadd [#allocation3], 4294967040 }
  0x18   :  { %242 = dma.done.wait [#allocation6], 64  }
  0x19   :  { %243 = vsyncadd [#allocation6], 4294967232  ;;  %v270_v0 = vld [vmem:[#allocation2] sm:$0xff]  ;;  %v272_v1 = vld [vmem:[#allocation2 + $0x8] sm:$0xff]  ;;  %v89_v37 = vlaneseq  ;;  %s248_s0 = smov [#allocation7]  }
  0x1a   :  { %v44_v2 = vrot.slane %v270_v0, 4  ;;  %v56_v3 = vmul.f32 %v270_v0, %v270_v0  ;;  %v50_v4 = vrot.slane %v272_v1, 4  ;;  %v57_v5 = vmul.f32 %v272_v1, %v272_v1  ;;  %v41_v43 = vld [vmem:[#allocation5] sm:$0xf]  ;;  %s151_s1 = sshll.u32 %s248_s0, 4  ;;  %s152_s1 = int_to_ptr.vmem [resolvable:$true] %s151_s1 }
  0x1b   :  { %v90_v41 = vshrl.u32 %v89_v37, 7  ;;  %s220_s19 = scalar_lea.vmem %s152_s1, 256  ;;  %p225_p11 = scmp.lt.s32.totalorder %s152_s1, %s152_s1 }
  0x1c   :  { %v45_v6 = vadd.f32 %v44_v2, %v270_v0  ;;  %v58_v7 = vrot.slane %v56_v3, 4  ;;  %v51_v8 = vadd.f32 %v50_v4, %v272_v1  ;;  %v64_v9 = vrot.slane %v57_v5, 4  ;;  %p221_p10 = scmp.ne.s32.totalorder %s152_s1, %s220_s19  ;;  %p226_p12 = scmp.lt.s32.totalorder %s220_s19, %s220_s19 }
  0x1d   :  { %v91_v42 = vsub.s32 0, %v90_v41  ;;  %v95_v44 = vsub.s32 2, %v90_v41  ;;  %v111_v45 = vsub.s32 1, %v90_v41  ;;  %v115_v46 = vsub.s32 3, %v90_v41 }
  0x1e   :  { %v46_v10 = vrot.slane %v45_v6, 2  ;;  %v59_v11 = vadd.f32 %v58_v7, %v56_v3  ;;  %v52_v12 = vrot.slane %v51_v8, 2  ;;  %v65_v13 = vadd.f32 %v64_v9, %v57_v5  ;;  %p227_p13 = por %p226_p12, %p225_p11 }
  0x1f   :  { %v92_v47 = vrot.slane %v41_v43, %v91_v42  ;;  %v96_v48 = vrot.slane %v41_v43, %v95_v44  ;;  %v112_v50 = vrot.slane %v41_v43, %v111_v45  ;;  %v116_v52 = vrot.slane %v41_v43, %v115_v46 }
  0x20   :  { %v47_v14 = vadd.f32 %v46_v10, %v45_v6  ;;  %v60_v15 = vrot.slane %v59_v11, 2  ;;  %v53_v16 = vadd.f32 %v52_v12, %v51_v8  ;;  %v66_v17 = vrot.slane %v65_v13, 2  ;;  %p228_p0 = pnand %p227_p13, %p221_p10 }
  0x21   :  { %v102_v53 = vrot.slane %v92_v47, %v91_v42  ;;  %v106_v55 = vrot.slane %v96_v48, %v91_v42  ;;  %v122_v58 = vrot.slane %v112_v50, %v111_v45  ;;  %v126_v60 = vrot.slane %v116_v52, %v111_v45 }
  0x22   :  { %v48_v18 = vrot.slane %v47_v14, 1  ;;  %v61_v19 = vadd.f32 %v60_v15, %v59_v11  ;;  %v54_v20 = vrot.slane %v53_v16, 1  ;;  %v67_v21 = vadd.f32 %v66_v17, %v65_v13 }
  0x24   :  { %v49_v22 = vadd.f32 %v48_v18, %v47_v14  ;;  %v62_v23 = vrot.slane %v61_v19, 1  ;;  %v55_v24 = vadd.f32 %v54_v20, %v53_v16  ;;  %v68_v25 = vrot.slane %v67_v21, 1 }
  0x26   :  { %v63_v26 = vadd.f32 %v62_v23, %v61_v19  ;;  %v70_v27 = vmul.f32 0.125, %v49_v22  ;;  %v69_v28 = vadd.f32 %v68_v25, %v67_v21  ;;  %v71_v29 = vmul.f32 0.125, %v55_v24 }
  0x28   :  { %v72_v30 = vmul.f32 0.125, %v63_v26  ;;  %v74_v31 = vmul.f32 %v70_v27, %v70_v27  ;;  %v73_v32 = vmul.f32 0.125, %v69_v28  ;;  %v75_v33 = vmul.f32 %v71_v29, %v71_v29 }
  0x29   :  { %v80_v49 = vsub.f32 %v270_v0, %v70_v27  ;;  %v81_v51 = vsub.f32 %v272_v1, %v71_v29 }
  0x2a   :  { %v76_v34 = vsub.f32 %v72_v30, %v74_v31  ;;  %v77_v35 = vsub.f32 %v73_v32, %v75_v33 }
  0x2c   :  { %v78_v36 = vmax.f32 %v76_v34, 0.0  ;;  %v79_v38 = vmax.f32 %v77_v35, 0.0 }
  0x2e   :  { %v82_v39 = vadd.f32 1e-05, %v78_v36  ;;  %v83_v40 = vadd.f32 1e-05, %v79_v38 }
  0x30   :  { %168 = vrsqrt.f32 %v82_v39 }
  0x31   :  { %170 = vrsqrt.f32 %v83_v40 }
  0x3d   :  { %v169_v54 = vpop.eup %168 }
  0x3e   :  { %v171_v56 = vpop.eup %170  ;;  %v86_v57 = vmul.f32 %v169_v54, %v80_v49 }
  0x3f   :  { %v87_v59 = vmul.f32 %v171_v56, %v81_v51 }
  0x40   :  { %v107_v61 = vmul.f32 %v102_v53, %v86_v57 }
  0x41   :  { %v108_v62 = vmul.f32 %v106_v55, %v87_v59 }
  0x42   :  { %v127_v63 = vadd.f32 %v122_v58, %v107_v61 }
  0x43   :  { %v128_v2 = vadd.f32 %v126_v60, %v108_v62 }
  0x44   :  { %v163_v3 = vmul.f32 -1.442695, %v127_v63 }
  0x45   :  { %v164_v4 = vmul.f32 -1.442695, %v128_v2 }
  0x46   :  { %172 = vpow2.f32 %v163_v3 }
  0x47   :  { %174 = vpow2.f32 %v164_v4 }
  0x53   :  { %v173_v5 = vpop.eup %172 }
  0x54   :  { %v175_v6 = vpop.eup %174  ;;  %v135_v7 = vadd.f32 1.0, %v173_v5 }
  0x55   :  { %v136_v8 = vadd.f32 1.0, %v175_v6 }
  0x56   :  { %176 = vrcp.f32 %v135_v7 }
  0x57   :  { %178 = vrcp.f32 %v136_v8 }
  0x63   :  { %v177_v9 = vpop.eup %176 }
  0x64   :  { %v179_v10 = vpop.eup %178  ;;  %v141_v11 = vmul.f32 %v177_v9, %v270_v0 }
  0x65   :  { %v142_v12 = vmul.f32 %v179_v10, %v272_v1 }
  0x66   :  { %143 = vst [vmem:[#allocation7] sm:$0xff] %v141_v11 }
  0x67   :  { %144 = vst [vmem:[#allocation7 + $0x8] sm:$0xff] %v142_v12 }
  0x68   :  { %231 = shalt.err (!%p228_p0)
}
  0x69   :  { %154 = dma.vmem_to_hbm [thread:$0]  %s152_s1, 256, %s291_s2, [#allocation4]  }
  0x6a   :  { %244 = dma.done.wait [#allocation4], 256  }
  0x6b   :  { %245 = vsyncadd [#allocation4], 4294967040 }
  0x6c   :  { %158 = vsyncpa [#allocation3], 1 }
  0x6d   :  { %159 = vsyncpa [#allocation6], 1 }
  0x6e   :  { %160 = vsyncpa [#allocation4], 1 }

</bundles_post_ra>
